<compile_context>
chip_gen: v6e
topology: v6e:2x2x1
jax: 0.10.0
libtpu: 0.0.40
codegen_flags: <defaults>
</compile_context>

<pallas_src>
import functools

import jax
import jax.numpy as jnp
import numpy as np
from jax.experimental import pallas as pl
from jax.experimental.pallas import tpu as pltpu


# ----------------------------------------------------------------------------
# Kernel: one (batch, spatial-tile) block per grid step.
#   x_ref : (1, C, T)   activations
#   g_ref : (C, 1)      learnable per-channel scale
#   o_ref : (1, C, T)   output
# ----------------------------------------------------------------------------
def _layernorm_chan_kernel(x_ref, g_ref, o_ref, *, eps):
    x = x_ref[0]                                    # (C, T)
    c_inv = jnp.float32(1.0 / x.shape[0])

    mean = jnp.sum(x, axis=0, keepdims=True) * c_inv        # (1, T)
    xc = x - mean
    var = jnp.sum(xc * xc, axis=0, keepdims=True) * c_inv   # biased (unbiased=False)
    inv_std = jax.lax.rsqrt(var + jnp.float32(eps))          # EUP slot

    o_ref[0] = xc * inv_std * g_ref[...]             # g broadcasts along lanes


# ----------------------------------------------------------------------------
# Spatial tile choice: largest multiple of 128 that divides H*W and keeps the
# per-step block comfortably inside the scoped-VMEM defaults on all chips.
# ----------------------------------------------------------------------------
def _pick_spatial_tile(hw, c, bytes_per_elem=4, budget_bytes=2 * 1024 * 1024):
    if hw % 128 != 0:
        return hw                      # full-extent block (allowed by Pallas)
    max_t = max(128, budget_bytes // max(1, c * bytes_per_elem))
    t = 128
    while t * 2 <= max_t and t * 2 <= hw and hw % (t * 2) == 0:
        t *= 2
    return t


# ----------------------------------------------------------------------------
# Wrapper (pure layout plumbing + pallas_call).
#   x_nchw : (N, C, H, W)
#   g      : (1, C, 1, 1)
# ----------------------------------------------------------------------------
def layernorm_forward(x_nchw, g):
    N, C, H, W = x_nchw.shape
    HW = H * W
    eps = 1e-5 if x_nchw.dtype == jnp.float32 else 1e-3

    x = x_nchw.reshape(N, C, HW)                 # contiguous reshape, free
    g2 = g.reshape(C, 1).astype(x.dtype)

    T = _pick_spatial_tile(HW, C, jnp.dtype(x.dtype).itemsize)
    grid = (N, HW // T)

    bytes_per = jnp.dtype(x.dtype).itemsize
    cost = pl.CostEstimate(
        flops=8 * N * C * HW,                     # sums, sub, square, 2 muls
        transcendentals=N * HW,                   # rsqrt per (n, h, w)
        bytes_accessed=bytes_per * (2 * N * C * HW + C),
    )

    out = pl.pallas_call(
        functools.partial(_layernorm_chan_kernel, eps=float(eps)),
        out_shape=jax.ShapeDtypeStruct((N, C, HW), x.dtype),
        grid=grid,
        in_specs=[
            pl.BlockSpec((1, C, T), lambda n, s: (n, 0, s)),
            pl.BlockSpec((C, 1), lambda n, s: (0, 0)),
        ],
        out_specs=pl.BlockSpec((1, C, T), lambda n, s: (n, 0, s)),
        compiler_params=pltpu.CompilerParams(
            dimension_semantics=("parallel", "parallel")),
        cost_estimate=cost,
    )(x, g2)

    return out.reshape(N, C, H, W)


# ----------------------------------------------------------------------------
# Pure-JAX reference for the correctness check.
# ----------------------------------------------------------------------------
def reference_layernorm(x_nchw, g):
    eps = 1e-5 if x_nchw.dtype == jnp.float32 else 1e-3
    mean = jnp.mean(x_nchw, axis=1, keepdims=True)
    var = jnp.mean((x_nchw - mean) ** 2, axis=1, keepdims=True)   # unbiased=False
    return (x_nchw - mean) * jax.lax.rsqrt(var + eps) * g


if __name__ == "__main__":
    key = jax.random.PRNGKey(0)
    kx, kg = jax.random.split(key)

    N, C, H, W = 2, 4, 16, 16
    x = jax.random.normal(kx, (N, C, H, W), jnp.float32)
    # nn.Parameter(torch.ones(1, C, 1, 1)) default is ones; perturb slightly so
    # the scale path is actually exercised by the check.
    g = 1.0 + 0.1 * jax.random.normal(kg, (1, C, 1, 1), jnp.float32)

    fwd = jax.jit(layernorm_forward)
    out = jax.block_until_ready(fwd(x, g))
    ref = jax.block_until_ready(reference_layernorm(x, g))

    assert out.shape == (N, C, H, W), out.shape
    np.testing.assert_allclose(np.asarray(out), np.asarray(ref),
                               rtol=1e-5, atol=1e-5)
    print("KERNEL_OK")
</pallas_src>

<mosaic_0001>
module attributes {stable_mosaic.version = 11 : i64} {
  func.func @_layernorm_chan_kernel(%arg0: i32, %arg1: i32, %arg2: memref<1x4x256xf32, #tpu.memory_space<vmem>>, %arg3: memref<4x1xf32, #tpu.memory_space<vmem>>, %arg4: memref<1x4x256xf32, #tpu.memory_space<vmem>>) attributes {dimension_semantics = [#tpu.dimension_semantics<parallel>, #tpu.dimension_semantics<parallel>], iteration_bounds = array<i64: 2, 1>, scalar_prefetch = 0 : i64, scratch_operands = 0 : i64, tpu.core_type = #tpu.core_type<tc>, window_params = [{transform_indices = @transform_0, window_bounds = array<i64: 1, 4, 256>}, {pipeline_mode = #tpu.pipeline_mode<synchronous>, transform_indices = @transform_1, window_bounds = array<i64: 4, 1>}, {transform_indices = @transform_2, window_bounds = array<i64: 1, 4, 256>}]} {
    %c0 = arith.constant 0 : index
    %c0_0 = arith.constant 0 : index
    %c0_1 = arith.constant 0 : index
    %0 = vector.load %arg2[%c0, %c0_0, %c0_1] : memref<1x4x256xf32, #tpu.memory_space<vmem>>, vector<1x4x256xf32>
    %1 = vector.shape_cast %0 : vector<1x4x256xf32> to vector<4x256xf32>
    %cst = arith.constant dense<0.000000e+00> : vector<256xf32>
    %2 = vector.multi_reduction <add>, %1, %cst [0] : vector<4x256xf32> to vector<256xf32>
    %3 = vector.shape_cast %2 : vector<256xf32> to vector<1x256xf32>
    %cst_2 = arith.constant 2.500000e-01 : f32
    %4 = vector.broadcast %cst_2 : f32 to vector<1x256xf32>
    %5 = arith.mulf %3, %4 : vector<1x256xf32>
    %6 = vector.broadcast %5 : vector<1x256xf32> to vector<4x256xf32>
    %7 = arith.subf %1, %6 : vector<4x256xf32>
    %8 = arith.mulf %7, %7 : vector<4x256xf32>
    %cst_3 = arith.constant dense<0.000000e+00> : vector<256xf32>
    %9 = vector.multi_reduction <add>, %8, %cst_3 [0] : vector<4x256xf32> to vector<256xf32>
    %10 = vector.shape_cast %9 : vector<256xf32> to vector<1x256xf32>
    %cst_4 = arith.constant 2.500000e-01 : f32
    %11 = vector.broadcast %cst_4 : f32 to vector<1x256xf32>
    %12 = arith.mulf %10, %11 : vector<1x256xf32>
    %cst_5 = arith.constant 9.99999974E-6 : f32
    %13 = vector.broadcast %cst_5 : f32 to vector<1x256xf32>
    %14 = arith.addf %12, %13 : vector<1x256xf32>
    %15 = math.rsqrt %14 : vector<1x256xf32>
    %16 = vector.broadcast %15 : vector<1x256xf32> to vector<4x256xf32>
    %17 = arith.mulf %7, %16 : vector<4x256xf32>
    %c0_6 = arith.constant 0 : index
    %c0_7 = arith.constant 0 : index
    %18 = vector.load %arg3[%c0_6, %c0_7] : memref<4x1xf32, #tpu.memory_space<vmem>>, vector<4x1xf32>
    %19 = vector.broadcast %18 : vector<4x1xf32> to vector<4x256xf32>
    %20 = arith.mulf %17, %19 : vector<4x256xf32>
    %c0_8 = arith.constant 0 : index
    %c0_9 = arith.constant 0 : index
    %c0_10 = arith.constant 0 : index
    %21 = vector.load %arg4[%c0_8, %c0_9, %c0_10] : memref<1x4x256xf32, #tpu.memory_space<vmem>>, vector<1x4x256xf32>
    %22 = vector.shape_cast %21 : vector<1x4x256xf32> to vector<4x256xf32>
    %23 = vector.shape_cast %20 : vector<4x256xf32> to vector<1x4x256xf32>
    tpu.vector_store %arg4[%c0_8, %c0_9, %c0_10], %23 {strides = array<i32>} : memref<1x4x256xf32, #tpu.memory_space<vmem>>, vector<1x4x256xf32>,
    return
  }
  func.func @transform_0(%arg0: i32, %arg1: i32) -> (i32, i32, i32) {
    %c0_i32 = arith.constant 0 : i32
    %c0_i32_0 = arith.constant 0 : i32
    return %arg0, %c0_i32, %arg1 : i32, i32, i32
  }
  func.func @transform_1(%arg0: i32, %arg1: i32) -> (i32, i32) {
    %c0_i32 = arith.constant 0 : i32
    %c0_i32_0 = arith.constant 0 : i32
    %c0_i32_1 = arith.constant 0 : i32
    return %c0_i32, %c0_i32_0 : i32, i32
  }
  func.func @transform_2(%arg0: i32, %arg1: i32) -> (i32, i32, i32) {
    %c0_i32 = arith.constant 0 : i32
    %c0_i32_0 = arith.constant 0 : i32
    return %arg0, %c0_i32, %arg1 : i32, i32, i32
  }
}

</mosaic_0001>

<bundles_post_ra>
// kernel: layernorm_forward.1
= control target key start
LH: loop header
LB: loop body
LE: loop exit
PB: predicated region body
PF: predicated region fallthrough
CT: control target
= control target key end

     0   :  { %s426_s9 = smov 0   ;;  %s428_s10 = smov 0   ;;  %s473_s0 = inlined_call_operand.vmem [shape: f32[2,4,256], index: 0, kind: input, shape index: {}]   ;;  %s474_s1 = inlined_call_operand.vmem [shape: f32[4,1], index: 1, kind: input, shape index: {}]   ;;  %s475_s2 = inlined_call_operand.vmem [shape: f32[2,4,256], index: 2, kind: output, shape index: {}]  }
   0x1   :  { %s430_s11 = smov 0  }
   0x2 LB: > { %s24_s12 = sadd.s32 1, %s403_s10  ;;  %p344_p0 = scmp.ge.s32.totalorder %s407_s11, 1  ;;  %s407_s11 = sphi %s430_s11, %s12_s11   ;;  %s403_s10 = sphi %s428_s10, %s477_s10   ;;  %s399_s9 = sphi %s426_s9, %s476_s9  }
   0x3   : > { %p26_p1 = scmp.ge.s32.totalorder %s24_s12, 2  ;;  %p133_p2 = scmp.lt.s32.totalorder %s407_s11, 3 }
   0x5   : > { %s479_s12 = smov (%p26_p1, %s24_s12), 0  ;;  %p134_p3 = pnand %p344_p0, %p133_p2 }
   0x6   : > { %p164_p4 = scmp.lt.s32.totalorder (!%p134_p3), %s399_s9, 1 }
   0x7   : > { %137 = sbr.rel (%p134_p3) target bundleno = 143 (0x8f), region = 28 }
   0xc   : > { %v238_v0 = vld [vmem:[%s474_s1] sm:$0xf]  ;;  %v409_v1 = vmov 0   ;;  %s481_s9 = smov (!%p164_p4, %s399_s9), 1  ;;  %vm187_vm0 = vcmask 1043456   ;;  %v246_v44 = vlaneseq }
   0xd   : > { %379 = vset.pattern.permute.xlu0 %v409_v1  ;;  %s351_s15 = sshll.u32 %s481_s9, 3  ;;  %v410_v42 = vmov 839922192  }
   0xe   : > { %241 = vperm.xlu0 %379, %v238_v0   ;;  %s171_s18 = scalar_lea.vmem %s473_s0, %s351_s15  ;;  %v244_v43 = vunpack.c.l.s4 %v410_v42  ;;  %v247_v48 = vshrl.u32 %v246_v44, 7  ;;  %s181_s21 = scalar_lea.vmem %s475_s2, %s351_s15 }
   0xf   : > { %v183_v2 = vld [vmem:[%s171_s18] sm:$0xff] }
  0x10   : > { %v185_v3 = vcombine.high %v183_v2, %v183_v2  ;;  %v188_v4 = vsel %vm187_vm0, %v183_v2, 0.0  ;;  %v245_v47 = vunpack.c.0.s8 %v244_v43 }
  0x11   : > { %v189_v6 = vrot.slane %v188_v4, 4 }
  0x12   : > { %v195_v5 = vsel %vm187_vm0, %v185_v3, 0.0  ;;  %v248_v50 = vsub.s32 %v245_v47, %v247_v48 }
  0x13   : > { %v196_v7 = vrot.slane %v195_v5, 4  ;;  %v190_v8 = vadd.f32 %v189_v6, %v188_v4 }
  0x15   : > { %v197_v9 = vadd.f32 %v196_v7, %v195_v5  ;;  %v191_v10 = vrot.slane %v190_v8, 2 }
  0x17   : > { %v198_v11 = vrot.slane %v197_v9, 2  ;;  %v192_v12 = vadd.f32 %v191_v10, %v190_v8 }
  0x19   : > { %v199_v13 = vadd.f32 %v198_v11, %v197_v9  ;;  %v193_v14 = vrot.slane %v192_v12, 1 }
  0x1b   : > { %v200_v15 = vrot.slane %v199_v13, 1  ;;  %v194_v16 = vadd.f32 %v193_v14, %v192_v12 }
  0x1d   : > { %v201_v17 = vadd.f32 %v200_v15, %v199_v13  ;;  %v202_v18 = vmul.f32 0.25, %v194_v16 }
  0x1f   : > { %v203_v19 = vmul.f32 0.25, %v201_v17 }
  0x21   : > { %v206_v20 = vcombine.low %v202_v18, %v203_v19 }
  0x23   : > { %v208_v21 = vsub.f32 %v183_v2, %v206_v20 }
  0x25   : > { %v209_v22 = vmul.f32 %v208_v21, %v208_v21 }
  0x27   : > { %v211_v23 = vcombine.high %v209_v22, %v209_v22  ;;  %v213_v24 = vsel %vm187_vm0, %v209_v22, 0.0 }
  0x28   : > { %v214_v26 = vrot.slane %v213_v24, 4 }
  0x29   : > { %v220_v25 = vsel %vm187_vm0, %v211_v23, 0.0 }
  0x2a   : > { %v221_v27 = vrot.slane %v220_v25, 4  ;;  %v215_v28 = vadd.f32 %v214_v26, %v213_v24 }
  0x2c   : > { %v222_v29 = vadd.f32 %v221_v27, %v220_v25  ;;  %v216_v30 = vrot.slane %v215_v28, 2 }
  0x2e   : > { %v223_v31 = vrot.slane %v222_v29, 2  ;;  %v217_v32 = vadd.f32 %v216_v30, %v215_v28 }
  0x30   : > { %v224_v33 = vadd.f32 %v223_v31, %v222_v29  ;;  %v218_v34 = vrot.slane %v217_v32, 1 }
  0x32   : > { %v225_v35 = vrot.slane %v224_v33, 1  ;;  %v219_v36 = vadd.f32 %v218_v34, %v217_v32 }
  0x34   : > { %v226_v37 = vadd.f32 %v225_v35, %v224_v33  ;;  %v227_v38 = vmul.f32 0.25, %v219_v36 }
  0x36   : > { %v228_v39 = vmul.f32 0.25, %v226_v37  ;;  %v229_v40 = vadd.f32 1e-05, %v227_v38 }
  0x38   : > { %v230_v41 = vadd.f32 1e-05, %v228_v39  ;;  %381 = vrsqrt.f32 %v229_v40 }
  0x3a   : > { %383 = vrsqrt.f32 %v230_v41 }
  0x45   : > { %v382_v45 = vpop.eup %381 }
  0x47   : > { %v384_v46 = vpop.eup %383 }
  0x48   : > { %v235_v49 = vcombine.low %v382_v45, %v384_v46 }
  0x4a   : > { %v237_v51 = vmul.f32 %v235_v49, %v208_v21 }
  0x89   : > { %v242_v52 = vpop.permute.xlu0 %241 }
  0x8a   : > { %v249_v53 = vrot.slane %v242_v52, %v248_v50 }
  0x8c   : > { %v251_v54 = vmul.f32 %v249_v53, %v237_v51 }
  0x8e   : > { %252 = vst [vmem:[%s181_s21] sm:$0xff] %v251_v54 }
  0x8f PF: > { %s12_s11 = sadd.s32 1, %s407_s11   ;;  %s476_s9 = smov %s403_s10 }
  0x90   : > { %p9_p5 = scmp.ge.s32.totalorder %s12_s11, 4   ;;  %s477_s10 = smov %s479_s12 }
  0x92   :  { %11 = sbr.rel (!%p9_p5) target bundleno = 2 (0x2), region = 58 }

</bundles_post_ra>
